<compile_context>
chip_gen: v7x
topology: tpu7x:2x2x1
jax: 0.10.0
libtpu: 0.0.40
codegen_flags: <defaults>
</compile_context>

<pallas_src>
import jax
import jax.numpy as jnp
from jax.experimental import pallas as pl
from jax.experimental.pallas import tpu as pltpu

HIDDEN = 64
LANE = 128


def _round_up(n, m):
    return ((n + m - 1) // m) * m


def _mlp_kernel(x_ref, w1_ref, b1_ref, w2_ref, b2_ref, w3_ref, b3_ref, o_ref):
    # In-kernel bf16 cast of the f32 activation tile (hidden under DMA slack).
    xb = x_ref[...].astype(jnp.bfloat16)
    # Layer 1: (TB, in)bf16 @ (in, 64)bf16 -> f32 acc, + bias, ReLU
    h1 = jnp.dot(xb, w1_ref[...], preferred_element_type=jnp.float32)
    h1 = jnp.maximum(h1 + b1_ref[...], 0.0)
    # Layer 2: (TB, 64) @ (64, 64) -> f32 acc, + bias, ReLU
    h2 = jnp.dot(h1.astype(jnp.bfloat16), w2_ref[...],
                 preferred_element_type=jnp.float32)
    h2 = jnp.maximum(h2 + b2_ref[...], 0.0)
    # Layer 3: (TB, 64) @ (64, 128-padded) -> lane-dense output store
    out = jnp.dot(h2.astype(jnp.bfloat16), w3_ref[...],
                  preferred_element_type=jnp.float32)
    o_ref[...] = (out + b3_ref[...]).astype(o_ref.dtype)


def prepare_params(params):
    """One-time parameter preprocessing (call once, reuse across forwards).

    Accepts w1,b1,w2,b2,w3,b3 with weights as (in_features, out_features) and
    biases as (out,) or (1, out).  Returns (prep_dict, out_size) where the dict
    holds bf16 weights, f32 (1, N) biases, and layer-3 padded to 128 lanes.
    """
    def bias2d(b):
        return b.reshape(1, -1).astype(jnp.float32)

    w3 = params["w3"]
    out_size = int(w3.shape[1])
    out_pad = _round_up(max(out_size, LANE), LANE)

    w3p = jnp.zeros((HIDDEN, out_pad), jnp.bfloat16).at[:, :out_size].set(
        w3.astype(jnp.bfloat16))
    b3p = jnp.zeros((1, out_pad), jnp.float32).at[:, :out_size].set(
        bias2d(params["b3"]))

    prep = {
        "w1": params["w1"].astype(jnp.bfloat16),
        "b1": bias2d(params["b1"]),
        "w2": params["w2"].astype(jnp.bfloat16),
        "b2": bias2d(params["b2"]),
        "w3": w3p,
        "b3": b3p,
    }
    return prep, out_size


def cartpole_qnetwork_forward(x, prep, *, out_size, block_b=2048,
                              single_tile_max=2048):
    """x: (B, input_size) float32; prep/out_size from prepare_params()."""
    B, in_size = x.shape
    out_pad = prep["w3"].shape[1]

    # --- batch tiling (no over-padding): one tile for small batches ---
    bp8 = _round_up(max(B, 8), 8)
    if bp8 <= single_tile_max:
        n_steps = 1
        tb = bp8
    else:
        n_steps = pl.cdiv(bp8, block_b)
        if n_steps % 2:      # even grid -> both v7x TensorCores stay balanced
            n_steps += 1
        tb = _round_up(pl.cdiv(bp8, n_steps), 8)
    Bp = n_steps * tb
    if Bp != B:
        x = jnp.pad(x, ((0, Bp - B), (0, 0)))

    const2d = lambda i: (0, 0)  # weights/biases: same block every step (VMEM-resident)

    flops = 2 * Bp * (in_size * HIDDEN + HIDDEN * HIDDEN + HIDDEN * out_pad)
    bytes_accessed = (Bp * in_size * 4 + Bp * out_pad * 4
                      + 2 * (in_size * HIDDEN + HIDDEN * HIDDEN + HIDDEN * out_pad)
                      + 4 * (2 * HIDDEN + out_pad))

    out = pl.pallas_call(
        _mlp_kernel,
        out_shape=jax.ShapeDtypeStruct((Bp, out_pad), jnp.float32),
        grid=(n_steps,),
        in_specs=[
            pl.BlockSpec((tb, in_size), lambda i: (i, 0)),   # f32 activation stream
            pl.BlockSpec(prep["w1"].shape, const2d),
            pl.BlockSpec(prep["b1"].shape, const2d),
            pl.BlockSpec(prep["w2"].shape, const2d),
            pl.BlockSpec(prep["b2"].shape, const2d),
            pl.BlockSpec(prep["w3"].shape, const2d),
            pl.BlockSpec(prep["b3"].shape, const2d),
        ],
        out_specs=pl.BlockSpec((tb, out_pad), lambda i: (i, 0)),
        compiler_params=pltpu.CompilerParams(
            dimension_semantics=("parallel",)),
        cost_estimate=pl.CostEstimate(
            flops=flops, transcendentals=0, bytes_accessed=bytes_accessed),
    )(x, prep["w1"], prep["b1"], prep["w2"], prep["b2"], prep["w3"], prep["b3"])

    # Strip batch padding and the lane-dense output padding.
    return out[:B, :out_size]


def init_params(key, input_size, output_size, hidden=HIDDEN):
    """Deterministic init mimicking nn.Linear's U(-1/sqrt(fan_in), 1/sqrt(fan_in))."""
    ks = jax.random.split(key, 6)

    def linear(kw, kb, fan_in, fan_out):
        bound = 1.0 / jnp.sqrt(fan_in)
        w = jax.random.uniform(kw, (fan_in, fan_out), jnp.float32, -bound, bound)
        b = jax.random.uniform(kb, (1, fan_out), jnp.float32, -bound, bound)
        return w, b

    w1, b1 = linear(ks[0], ks[1], input_size, hidden)
    w2, b2 = linear(ks[2], ks[3], hidden, hidden)
    w3, b3 = linear(ks[4], ks[5], hidden, output_size)
    return {"w1": w1, "b1": b1, "w2": w2, "b2": b2, "w3": w3, "b3": b3}


def reference_forward(x, p):
    """Mirror the kernel's bf16-weight / f32-accumulate numerics."""
    xb = x.astype(jnp.bfloat16)
    w1 = p["w1"].astype(jnp.bfloat16)
    w2 = p["w2"].astype(jnp.bfloat16)
    w3 = p["w3"].astype(jnp.bfloat16)
    h1 = jnp.maximum(jnp.dot(xb, w1, preferred_element_type=jnp.float32) + p["b1"], 0.0)
    h2 = jnp.maximum(jnp.dot(h1.astype(jnp.bfloat16), w2,
                             preferred_element_type=jnp.float32) + p["b2"], 0.0)
    return jnp.dot(h2.astype(jnp.bfloat16), w3,
                   preferred_element_type=jnp.float32) + p["b3"]


if __name__ == "__main__":
    input_size = 4   # CartPole observation dim
    output_size = 2  # CartPole action dim

    key = jax.random.PRNGKey(0)
    kx, kp, kx2 = jax.random.split(key, 3)
    params = init_params(kp, input_size, output_size)

    # One-time parameter preparation (hoisted out of the per-call path).
    prep, out_size = prepare_params(params)

    # Jit the wrapper so pad + pallas_call + slice become a single dispatch.
    fwd = jax.jit(cartpole_qnetwork_forward,
                  static_argnames=("out_size", "block_b", "single_tile_max"))

    # Small CartPole-scale batch (single 8-row tile).
    batch = 8
    x = jax.random.normal(kx, (batch, input_size), dtype=jnp.float32)
    out = jax.block_until_ready(fwd(x, prep, out_size=out_size))
    ref = reference_forward(x, params)
    assert out.shape == (batch, output_size)
    assert jnp.allclose(out, ref, atol=1e-2, rtol=1e-2)

    # Non-multiple-of-8 batch: now a single 304-row tile (no over-padding to 512).
    batch2 = 300
    x2 = jax.random.normal(kx2, (batch2, input_size), dtype=jnp.float32)
    out2 = jax.block_until_ready(fwd(x2, prep, out_size=out_size))
    ref2 = reference_forward(x2, params)
    assert out2.shape == (batch2, output_size)
    assert jnp.allclose(out2, ref2, atol=1e-2, rtol=1e-2)

    # Exercise the large-batch multi-step path (even grid count) at small scale.
    out3 = jax.block_until_ready(
        fwd(x2, prep, out_size=out_size, block_b=128, single_tile_max=128))
    assert out3.shape == (batch2, output_size)
    assert jnp.allclose(out3, ref2, atol=1e-2, rtol=1e-2)

    print("KERNEL_OK")
</pallas_src>

<mosaic_0001>
module attributes {stable_mosaic.version = 11 : i64} {
  func.func @_mlp_kernel(%arg0: i32, %arg1: memref<8x4xf32, #tpu.memory_space<vmem>>, %arg2: memref<4x64xbf16, #tpu.memory_space<vmem>>, %arg3: memref<1x64xf32, #tpu.memory_space<vmem>>, %arg4: memref<64x64xbf16, #tpu.memory_space<vmem>>, %arg5: memref<1x64xf32, #tpu.memory_space<vmem>>, %arg6: memref<64x128xbf16, #tpu.memory_space<vmem>>, %arg7: memref<1x128xf32, #tpu.memory_space<vmem>>, %arg8: memref<8x128xf32, #tpu.memory_space<vmem>>) attributes {dimension_semantics = [#tpu.dimension_semantics<parallel>], iteration_bounds = array<i64: 1>, scalar_prefetch = 0 : i64, scratch_operands = 0 : i64, tpu.core_type = #tpu.core_type<tc>, window_params = [{transform_indices = @transform_0, window_bounds = array<i64: 8, 4>}, {pipeline_mode = #tpu.pipeline_mode<synchronous>, transform_indices = @transform_1, window_bounds = array<i64: 4, 64>}, {pipeline_mode = #tpu.pipeline_mode<synchronous>, transform_indices = @transform_2, window_bounds = array<i64: 1, 64>}, {pipeline_mode = #tpu.pipeline_mode<synchronous>, transform_indices = @transform_3, window_bounds = array<i64: 64, 64>}, {pipeline_mode = #tpu.pipeline_mode<synchronous>, transform_indices = @transform_4, window_bounds = array<i64: 1, 64>}, {pipeline_mode = #tpu.pipeline_mode<synchronous>, transform_indices = @transform_5, window_bounds = array<i64: 64, 128>}, {pipeline_mode = #tpu.pipeline_mode<synchronous>, transform_indices = @transform_6, window_bounds = array<i64: 1, 128>}, {transform_indices = @transform_7, window_bounds = array<i64: 8, 128>}]} {
    %c0 = arith.constant 0 : index
    %c0_0 = arith.constant 0 : index
    %0 = vector.load %arg1[%c0, %c0_0] : memref<8x4xf32, #tpu.memory_space<vmem>>, vector<8x4xf32>
    %1 = arith.truncf %0 : vector<8x4xf32> to vector<8x4xbf16>
    %c0_1 = arith.constant 0 : index
    %c0_2 = arith.constant 0 : index
    %2 = vector.load %arg2[%c0_1, %c0_2] : memref<4x64xbf16, #tpu.memory_space<vmem>>, vector<4x64xbf16>
    %cst = arith.constant dense<0.000000e+00> : vector<8x64xf32>
    %3 = tpu.matmul %1, %2, %cst {dimension_numbers = #tpu.dot_dimension_numbers<[1], [0], [0], [1], [0, 0, 1, 1], [], []>} : vector<8x4xbf16>, vector<4x64xbf16>, vector<8x64xf32> -> vector<8x64xf32>
    %c0_3 = arith.constant 0 : index
    %c0_4 = arith.constant 0 : index
    %4 = vector.load %arg3[%c0_3, %c0_4] : memref<1x64xf32, #tpu.memory_space<vmem>>, vector<1x64xf32>
    %5 = vector.broadcast %4 : vector<1x64xf32> to vector<8x64xf32>
    %6 = arith.addf %3, %5 : vector<8x64xf32>
    %cst_5 = arith.constant 0.000000e+00 : f32
    %7 = vector.broadcast %cst_5 : f32 to vector<8x64xf32>
    %8 = arith.maximumf %6, %7 : vector<8x64xf32>
    %9 = arith.truncf %8 : vector<8x64xf32> to vector<8x64xbf16>
    %c0_6 = arith.constant 0 : index
    %c0_7 = arith.constant 0 : index
    %10 = vector.load %arg4[%c0_6, %c0_7] : memref<64x64xbf16, #tpu.memory_space<vmem>>, vector<64x64xbf16>
    %cst_8 = arith.constant dense<0.000000e+00> : vector<8x64xf32>
    %11 = tpu.matmul %9, %10, %cst_8 {dimension_numbers = #tpu.dot_dimension_numbers<[1], [0], [0], [1], [0, 0, 1, 1], [], []>} : vector<8x64xbf16>, vector<64x64xbf16>, vector<8x64xf32> -> vector<8x64xf32>
    %c0_9 = arith.constant 0 : index
    %c0_10 = arith.constant 0 : index
    %12 = vector.load %arg5[%c0_9, %c0_10] : memref<1x64xf32, #tpu.memory_space<vmem>>, vector<1x64xf32>
    %13 = vector.broadcast %12 : vector<1x64xf32> to vector<8x64xf32>
    %14 = arith.addf %11, %13 : vector<8x64xf32>
    %cst_11 = arith.constant 0.000000e+00 : f32
    %15 = vector.broadcast %cst_11 : f32 to vector<8x64xf32>
    %16 = arith.maximumf %14, %15 : vector<8x64xf32>
    %17 = arith.truncf %16 : vector<8x64xf32> to vector<8x64xbf16>
    %c0_12 = arith.constant 0 : index
    %c0_13 = arith.constant 0 : index
    %18 = vector.load %arg6[%c0_12, %c0_13] : memref<64x128xbf16, #tpu.memory_space<vmem>>, vector<64x128xbf16>
    %cst_14 = arith.constant dense<0.000000e+00> : vector<8x128xf32>
    %19 = tpu.matmul %17, %18, %cst_14 {dimension_numbers = #tpu.dot_dimension_numbers<[1], [0], [0], [1], [0, 0, 1, 1], [], []>} : vector<8x64xbf16>, vector<64x128xbf16>, vector<8x128xf32> -> vector<8x128xf32>
    %c0_15 = arith.constant 0 : index
    %c0_16 = arith.constant 0 : index
    %20 = vector.load %arg7[%c0_15, %c0_16] : memref<1x128xf32, #tpu.memory_space<vmem>>, vector<1x128xf32>
    %21 = vector.broadcast %20 : vector<1x128xf32> to vector<8x128xf32>
    %22 = arith.addf %19, %21 : vector<8x128xf32>
    %c0_17 = arith.constant 0 : index
    %c0_18 = arith.constant 0 : index
    %23 = vector.load %arg8[%c0_17, %c0_18] : memref<8x128xf32, #tpu.memory_space<vmem>>, vector<8x128xf32>
    tpu.vector_store %arg8[%c0_17, %c0_18], %22 {strides = array<i32>} : memref<8x128xf32, #tpu.memory_space<vmem>>, vector<8x128xf32>,
    return
  }
  func.func @transform_0(%arg0: i32) -> (i32, i32) {
    %c0_i32 = arith.constant 0 : i32
    %c0_i32_0 = arith.constant 0 : i32
    return %arg0, %c0_i32 : i32, i32
  }
  func.func @transform_1(%arg0: i32) -> (i32, i32) {
    %c0_i32 = arith.constant 0 : i32
    %c0_i32_0 = arith.constant 0 : i32
    %c0_i32_1 = arith.constant 0 : i32
    return %c0_i32, %c0_i32_0 : i32, i32
  }
  func.func @transform_2(%arg0: i32) -> (i32, i32) {
    %c0_i32 = arith.constant 0 : i32
    %c0_i32_0 = arith.constant 0 : i32
    %c0_i32_1 = arith.constant 0 : i32
    return %c0_i32, %c0_i32_0 : i32, i32
  }
  func.func @transform_3(%arg0: i32) -> (i32, i32) {
    %c0_i32 = arith.constant 0 : i32
    %c0_i32_0 = arith.constant 0 : i32
    %c0_i32_1 = arith.constant 0 : i32
    return %c0_i32, %c0_i32_0 : i32, i32
  }
  func.func @transform_4(%arg0: i32) -> (i32, i32) {
    %c0_i32 = arith.constant 0 : i32
    %c0_i32_0 = arith.constant 0 : i32
    %c0_i32_1 = arith.constant 0 : i32
    return %c0_i32, %c0_i32_0 : i32, i32
  }
  func.func @transform_5(%arg0: i32) -> (i32, i32) {
    %c0_i32 = arith.constant 0 : i32
    %c0_i32_0 = arith.constant 0 : i32
    %c0_i32_1 = arith.constant 0 : i32
    return %c0_i32, %c0_i32_0 : i32, i32
  }
  func.func @transform_6(%arg0: i32) -> (i32, i32) {
    %c0_i32 = arith.constant 0 : i32
    %c0_i32_0 = arith.constant 0 : i32
    %c0_i32_1 = arith.constant 0 : i32
    return %c0_i32, %c0_i32_0 : i32, i32
  }
  func.func @transform_7(%arg0: i32) -> (i32, i32) {
    %c0_i32 = arith.constant 0 : i32
    %c0_i32_0 = arith.constant 0 : i32
    return %arg0, %c0_i32 : i32, i32
  }
}

</mosaic_0001>

<bundles_post_ra>
// kernel: cartpole_qnetwork_forward.1
= control target key start
LH: loop header
LB: loop body
LE: loop exit
PB: predicated region body
PF: predicated region fallthrough
CT: control target
= control target key end

     0   :  { %12 = vsyncpa [#allocation3], 0  ;;  %s599_s0 = inlined_call_operand.vmem [shape: f32[8,4], index: 0, kind: input, shape index: {}]   ;;  %s600_s1 = inlined_call_operand.vmem [shape: bf16[4,64], index: 1, kind: input, shape index: {}]   ;;  %s601_s2 = inlined_call_operand.hbm [shape: f32[1,64], index: 2, kind: input, shape index: {}]   ;;  %s602_s3 = inlined_call_operand.hbm [shape: bf16[64,64], index: 3, kind: input, shape index: {}]   ;;  %s603_s4 = inlined_call_operand.hbm [shape: f32[1,64], index: 4, kind: input, shape index: {}]   ;;  %s604_s5 = inlined_call_operand.vmem [shape: bf16[64,128], index: 5, kind: input, shape index: {}]   ;;  %s605_s6 = inlined_call_operand.hbm [shape: f32[1,128], index: 6, kind: input, shape index: {}]   ;;  %s606_s7 = inlined_call_operand.vmem [shape: f32[8,128], index: 7, kind: output, shape index: {}]  }
   0x1   :  { %13 = vsyncpa [#allocation5], 0 }
   0x2   :  { %14 = vsyncpa [#allocation8], 0  ;;  %s477_s24 = smov [#allocation4]   ;;  %s383_s28 = scalar_lea.hbm %s602_s3, 512 }
   0x3   :  { %s34_s25 = sshll.u32 %s477_s24, 4  ;;  %p384_p0 = scmp.ne.s32.totalorder %s602_s3, %s383_s28  ;;  %s35_s25 = int_to_ptr.vmem [resolvable:$true] %s34_s25 }
   0x4   :  { %p387_p1 = scmp.lt.u32.totalorder %s383_s28, %s602_s3 }
   0x6   :  { %p389_p2 = pnand %p387_p1, %p384_p0 }
   0x8   :  { %392 = shalt.err (!%p389_p2)
}
   0x9   :  { %s393_s10 = scalar_lea.vmem %s35_s25, 512  ;;  %p398_p4 = scmp.lt.s32.totalorder %s35_s25, %s35_s25 }
   0xa   :  { %p394_p3 = scmp.ne.s32.totalorder %s35_s25, %s393_s10  ;;  %p399_p5 = scmp.lt.s32.totalorder %s393_s10, %s393_s10 }
   0xc   :  { %p400_p6 = por %p399_p5, %p398_p4 }
   0xe   :  { %p401_p7 = pnand %p400_p6, %p394_p3 }
  0x10   :  { %404 = shalt.err (!%p401_p7)
}
  0x11   :  { %s478_s11 = smov 64   ;;  %s479_s12 = smov 4  }
  0x12   :  { %40 = dma.hbm_to_vmem [thread:$0]  %s602_s3, 512, %s35_s25, [#allocation5], %s478_s11, %s478_s11, %s479_s12  }
  0x13   :  { %s480_s15 = smov [#allocation2]   ;;  %s481_s17 = smov [#allocation6]  }
  0x14   :  { %s25_s16 = sshll.u32 %s480_s15, 4  ;;  %s47_s18 = sshll.u32 %s481_s17, 4  ;;  %s26_s16 = int_to_ptr.vmem [resolvable:$true] %s25_s16  ;;  %s48_s18 = int_to_ptr.vmem [resolvable:$true] %s47_s18 }
  0x15   :  { %s405_s21 = scalar_lea.hbm %s601_s2, 16 }
  0x16   :  { %p406_p8 = scmp.ne.s32.totalorder %s601_s2, %s405_s21  ;;  %p409_p9 = scmp.lt.u32.totalorder %s405_s21, %s601_s2 }
  0x18   :  { %p411_p10 = pnand %p409_p9, %p406_p8 }
  0x1a   :  { %414 = shalt.err (!%p411_p10)
}
  0x1b   :  { %s415_s3 = scalar_lea.vmem %s26_s16, 16  ;;  %s419_s25 = scalar_lea.vmem %s26_s16, 32 }
  0x1c   :  { %p416_p11 = scmp.ne.s32.totalorder %s26_s16, %s415_s3  ;;  %p420_p12 = scmp.lt.s32.totalorder %s26_s16, %s26_s16 }
  0x1d   :  { %p421_p13 = scmp.lt.s32.totalorder %s419_s25, %s415_s3 }
  0x1f   :  { %p422_p0 = por %p421_p13, %p420_p12 }
  0x21   :  { %p423_p1 = pnand %p422_p0, %p416_p11 }
  0x23   :  { %426 = shalt.err (!%p423_p1)
}
  0x24   :  { %28 = dma.hbm_to_vmem [thread:$0]  %s601_s2, 16, %s26_s16, [#allocation3]  }
  0x25   :  { %s427_s8 = scalar_lea.hbm %s603_s4, 16 }
  0x26   :  { %p428_p2 = scmp.ne.s32.totalorder %s603_s4, %s427_s8  ;;  %p431_p3 = scmp.lt.u32.totalorder %s427_s8, %s603_s4 }
  0x28   :  { %p433_p4 = pnand %p431_p3, %p428_p2 }
  0x2a   :  { %436 = shalt.err (!%p433_p4)
}
  0x2b   :  { %s437_s13 = scalar_lea.vmem %s48_s18, 16  ;;  %s441_s14 = scalar_lea.vmem %s48_s18, 32 }
  0x2c   :  { %p438_p5 = scmp.ne.s32.totalorder %s48_s18, %s437_s13  ;;  %p442_p6 = scmp.lt.s32.totalorder %s48_s18, %s48_s18 }
  0x2d   :  { %p443_p7 = scmp.lt.s32.totalorder %s441_s14, %s437_s13 }
  0x2f   :  { %p444_p8 = por %p443_p7, %p442_p6 }
  0x31   :  { %p445_p9 = pnand %p444_p8, %p438_p5 }
  0x33   :  { %448 = shalt.err (!%p445_p9)
}
  0x34   :  { %50 = dma.hbm_to_vmem [thread:$0]  %s603_s4, 16, %s48_s18, [#allocation5]  }
  0x35   :  { %s482_s16 = smov [#allocation7]   ;;  %s449_s21 = scalar_lea.hbm %s605_s6, 16 }
  0x36   :  { %s59_s17 = sshll.u32 %s482_s16, 4  ;;  %p450_p10 = scmp.ne.s32.totalorder %s605_s6, %s449_s21  ;;  %s60_s17 = int_to_ptr.vmem [resolvable:$true] %s59_s17 }
  0x37   :  { %p453_p11 = scmp.lt.u32.totalorder %s449_s21, %s605_s6 }
  0x39   :  { %p455_p12 = pnand %p453_p11, %p450_p10 }
  0x3b   :  { %458 = shalt.err (!%p455_p12)
}
  0x3c   :  { %s459_s3 = scalar_lea.vmem %s60_s17, 16  ;;  %s463_s4 = scalar_lea.vmem %s60_s17, 32 }
  0x3d   :  { %p460_p13 = scmp.ne.s32.totalorder %s60_s17, %s459_s3  ;;  %p464_p0 = scmp.lt.s32.totalorder %s60_s17, %s60_s17 }
  0x3e   :  { %p465_p1 = scmp.lt.s32.totalorder %s463_s4, %s459_s3 }
  0x40   :  { %p466_p2 = por %p465_p1, %p464_p0 }
  0x42   :  { %p467_p3 = pnand %p466_p2, %p460_p13 }
  0x44   :  { %470 = shalt.err (!%p467_p3)
}
  0x45   :  { %62 = dma.hbm_to_vmem [thread:$0]  %s605_s6, 16, %s60_s17, [#allocation8]  }
  0x46   :  { %471 = dma.done.wait [#allocation3], 16  }
  0x47   :  { %472 = vsyncadd [#allocation3], 4294967280 }
  0x48   :  { %473 = dma.done.wait [#allocation5], 528  }
  0x49   :  { %474 = vsyncadd [#allocation5], 4294966768 }
  0x4a   :  { %475 = dma.done.wait [#allocation8], 16  }
  0x4b   :  { %476 = vsyncadd [#allocation8], 4294967280  ;;  %v483_v0 = vmov 0.0   ;;  %vm484_vm0 = vmmov 0   ;;  %vm90_vm1 = vcmask 1041408   ;;  %v76_v2 = vld [vmem:[%s599_s0] sm:$0xff] }
  0x4c   :  { %337 = vmatprep.subr.bf16.mxu0 %v483_v0  ;;  %339 = vmatprep.mubr.msk.bf16.mxu0 %vm484_vm0, %v483_v0  ;;  %v78_v1 = vld [vmem:[%s600_s1] sm:$0x3]  ;;  %v77_v4 = vpack.c.bf16 %v76_v2, %v76_v2  ;;  %v375_v5 = vld [vmem:[#allocation4] sm:$0xff]   ;;  %vm86_vm2 = vcmask 31744   ;;  %v376_v6 = vld [vmem:[#allocation4 + $0x8] sm:$0xff]   ;;  %vm175_vm3 = vcmask 523264  }
  0x4d   :  { %343 = vmatprep.subr.bf16.mxu1 %v483_v0  ;;  %351 = vmatprep.mubr.msk.bf16.mxu1 %vm484_vm0, %v483_v0  ;;  %v92_v3 = vsel %vm90_vm1, %v78_v1, 0  ;;  %v377_v7 = vld [vmem:[#allocation4 + $0x10] sm:$0xff]   ;;  %v378_v8 = vld [vmem:[#allocation4 + $0x18] sm:$0xff]   ;;  %v380_v10 = vld [vmem:[%s604_s5 + $0x8] sm:$0xff]  }
  0x4e   :  { %338 = vmatpush3.bf16.msra.mxu0 %v92_v3  ;;  %344 = vmatpush3.bf16.msra.mxu1 %v375_v5  ;;  %v379_v9 = vld [vmem:[%s604_s5] sm:$0xff]   ;;  %v381_v19 = vld [vmem:[%s604_s5 + $0x10] sm:$0xff]   ;;  %v382_v20 = vld [vmem:[%s604_s5 + $0x18] sm:$0xff]  }
  0x4f   :  { %355 = vmatprep.subr.bf16.mxu0 %v483_v0  ;;  %345 = vmatprep.subr.bf16.mxu1 %v483_v0  ;;  %v311_v11 = vld [vmem:[#allocation2] ss:$0 sm:$0xff]  ;;  %v313_v21 = vld [vmem:[#allocation6] ss:$0 sm:$0xff]  ;;  %v319_v29 = vld [vmem:[#allocation7] ss:$0 sm:$0xff] }
  0x51   :  { %340 = vmatmul.mubr.msk.bf16.vlgmr.msra.gmra.mrb[0].mxu0 %vm86_vm2, %v77_v4 }
  0x52   :  { %363 = vmatprep.mubr.msk.bf16.mxu0 %vm484_vm0, %v483_v0  ;;  %346 = vmatpush3.bf16.msra.mxu1 %v376_v6 }
  0x53   :  { %347 = vmatprep.subr.bf16.mxu1 %v483_v0  ;;  %356 = vmatpush3.bf16.msra.mxu0 %v379_v9 }
  0x54   :  { %357 = vmatprep.subr.bf16.mxu0 %v483_v0 }
  0x56   :  { %348 = vmatpush3.bf16.msra.mxu1 %v377_v7 }
  0x57   :  { %349 = vmatprep.subr.bf16.mxu1 %v483_v0  ;;  %358 = vmatpush3.bf16.msra.mxu0 %v380_v10 }
  0x58   :  { %359 = vmatprep.subr.bf16.mxu0 %v483_v0 }
  0x5a   :  { %350 = vmatpush3.bf16.msra.mxu1 %v378_v8 }
  0x5b   :  { %360 = vmatpush3.bf16.msra.mxu0 %v381_v19 }
  0x5c   :  { %361 = vmatprep.subr.bf16.mxu0 %v483_v0 }
  0x5f   :  { %362 = vmatpush3.bf16.msra.mxu0 %v382_v20 }
 0x124   :  { %v128_v12 = vpop.f32.mrb[0].mxu0 }
 0x125   :  { %v129_v13 = vadd.f32 %v311_v11, %v128_v12  ;;  %v341_v14 = vpop.f32.mrb[1].mxu0 }
 0x126   :  { %v131_v15 = vpop.f32.mrb[2].mxu0 }
 0x127   :  { %v134_v16 = vmax.f32 %v129_v13, 0.0  ;;  %v342_v17 = vpop.f32.mrb[3].mxu0 }
 0x129   :  { %v135_v18 = vpack.c.bf16 %v134_v16, %v134_v16 }
 0x12b   :  { %352 = vmatmul.mubr.msk.bf16.vlgmr.msra.gmra.mrb[0].mxu1 %vm175_vm3, %v135_v18 }
 0x1fe   :  { %v213_v22 = vpop.f32.mrb[0].mxu1 }
 0x1ff   :  { %v214_v23 = vadd.f32 %v313_v21, %v213_v22  ;;  %v353_v24 = vpop.f32.mrb[1].mxu1 }
 0x200   :  { %v216_v25 = vpop.f32.mrb[2].mxu1 }
 0x201   :  { %v219_v26 = vmax.f32 %v214_v23, 0.0  ;;  %v354_v27 = vpop.f32.mrb[3].mxu1 }
 0x203   :  { %v220_v28 = vpack.c.bf16 %v219_v26, %v219_v26 }
 0x205   :  { %364 = vmatmul.mubr.msk.bf16.vlgmr.msra.gmra.mrb[4].mxu0 %vm175_vm3, %v220_v28 }
 0x2d8   :  { %v297_v30 = vpop.f32.mrb[4].mxu0 }
 0x2d9   :  { %v298_v31 = vadd.f32 %v319_v29, %v297_v30  ;;  %v365_v32 = vpop.f32.mrb[5].mxu0 }
 0x2da   :  { %v300_v33 = vpop.f32.mrb[6].mxu0 }
 0x2db   :  { %303 = vst [vmem:[%s606_s7] sm:$0xff] %v298_v31  ;;  %v366_v34 = vpop.f32.mrb[7].mxu0 }
 0x2dc   :  { %308 = vsyncpa [#allocation3], 1 }
 0x2dd   :  { %309 = vsyncpa [#allocation5], 1 }
 0x2de   :  { %310 = vsyncpa [#allocation8], 1 }

</bundles_post_ra>
